<compile_context>
chip_gen: v7x
topology: tpu7x:2x2x1
jax: 0.10.0
libtpu: 0.0.40
codegen_flags: <defaults>
</compile_context>

<pallas_src>
import functools

import jax
import jax.numpy as jnp
from jax.experimental import pallas as pl
from jax.experimental.pallas import tpu as pltpu


def _round_up(n, m):
    return ((n + m - 1) // m) * m


def _i32(x):
    """Python int -> wrapped int32 constant (two's complement)."""
    x &= 0xFFFFFFFF
    if x >= 1 << 31:
        x -= 1 << 32
    return jnp.int32(x)


def _keep_mask(shape, col_base, seed, salt, thresh24):
    """Counter-based hash Bernoulli keep-mask, pure int32 jnp ops.

    Works on both the Mosaic TPU backend and in interpret mode (no
    pltpu.prng_*).  Keep probability = 1 - thresh24 / 2**24.  Uses the global
    (row, batch-column) element index, so masks are unique per tile and
    independent of the tiling.
    """
    r = jax.lax.broadcasted_iota(jnp.int32, shape, 0)
    c = jax.lax.broadcasted_iota(jnp.int32, shape, 1) + col_base
    h = seed + _i32(salt)
    h = h + r * _i32(0x9E3779B1) + c * _i32(0x85EBCA77)
    # murmur3-style finalizer; logical shifts emulated with arith shift + mask
    h = h ^ ((h >> 16) & 0xFFFF)
    h = h * _i32(0x85EBCA6B)
    h = h ^ ((h >> 13) & 0x7FFFF)
    h = h * _i32(0xC2B2AE35)
    h = h ^ ((h >> 16) & 0xFFFF)
    u24 = (h >> 8) & 0xFFFFFF            # uniform 24-bit value in [0, 2^24)
    return u24 >= thresh24


def fc_kernel(seed_ref, b3_ref, x_ref, w1_ref, b1_ref, w2_ref, b2_ref, w3_ref,
              o_ref, *, thresh1, thresh2, tile_n):
    """One batch tile, feature-major layout.

    x_ref  : (C_in, TILE_N) bf16   (lane-dense along batch)
    w1_ref : (H1, C_in) bf16       b1_ref : (H1, 1) f32
    w2_ref : (H2, H1)  bf16 (pre-scaled by 1/(1-p1))   b2_ref : (H2, 1) f32
    w3_ref : (H2, 1)   f32  (pre-scaled by 1/(1-p2))   b3_ref : (1,)  f32 SMEM
    o_ref  : (1, TILE_N) f32       (lane-dense output row)
    """
    seed = seed_ref[0]
    col_base = pl.program_id(0) * tile_n          # global batch offset of tile

    x = x_ref[...]                                                # bf16
    # layer 1: MXU, bf16 operands, f32 accumulation
    h = jnp.dot(w1_ref[...], x, preferred_element_type=jnp.float32)
    h = h + b1_ref[...]                           # (H1,1) lane-broadcast bias
    if thresh1 > 0:  # dropout p1 (inverted-dropout scale folded into w2)
        h = jnp.where(_keep_mask(h.shape, col_base, seed, 0x1234567, thresh1),
                      h, 0.0)
    h = jnp.maximum(h, 0.0)                       # ReLU

    # layer 2: MXU, bf16 operands, f32 accumulation
    h = jnp.dot(w2_ref[...], h.astype(jnp.bfloat16),
                preferred_element_type=jnp.float32)
    h = h + b2_ref[...]
    if thresh2 > 0:  # dropout p2 (scale folded into w3)
        h = jnp.where(_keep_mask(h.shape, col_base, seed, 0x7654321, thresh2),
                      h, 0.0)
    h = jnp.maximum(h, 0.0)

    # layer 3: output width 1 -> keep it OFF the MXU.  VPU broadcast-multiply
    # + cross-sublane reduce gives a lane-dense (1, TILE_N) row directly.
    z = jnp.sum(h * w3_ref[...], axis=0, keepdims=True) + b3_ref[0]
    o_ref[...] = 1.0 / (1.0 + jnp.exp(-z))        # sigmoid (exp on EUP)


def fc_forward(x, params, seed, p1=0.5, p2=0.2, tile_n_max=1024):
    """Forward pass matching FCModel.forward; returns (out, None, None).

    Dropout is active, mirroring torch's F.dropout(training=True) default.
    """
    if p1 >= 1.0 or p2 >= 1.0:
        raise ValueError("dropout probability must be < 1.0")
    w1, b1, w2, b2, w3, b3 = params       # torch nn.Linear layout: (out, in)
    n, c_in = x.shape
    h1, h2 = w1.shape[0], w2.shape[0]

    # Fold the 1/(1-p) inverted-dropout scales into the downstream weights
    # (once, O(weights)); in-kernel dropout is then a plain where(keep, h, 0).
    s1 = 1.0 / (1.0 - p1) if p1 > 0.0 else 1.0
    s2 = 1.0 / (1.0 - p2) if p2 > 0.0 else 1.0
    w1_k = w1.astype(jnp.bfloat16)
    w2_k = (w2 * s1).astype(jnp.bfloat16)
    w3_k = (w3 * s2).astype(jnp.float32).reshape(h2, 1)
    b1_k = b1.astype(jnp.float32).reshape(h1, 1)
    b2_k = b2.astype(jnp.float32).reshape(h2, 1)
    b3_k = b3.astype(jnp.float32).reshape(1)
    seed_k = jnp.asarray(seed, dtype=jnp.int32).reshape(1)

    # Lane-dense, batch-tiled layout: x as (C_in, N_pad) bf16, TILE_N a
    # multiple of 128 (<= tile_n_max), batch zero-padded to a tile multiple.
    tile_n = min(tile_n_max, _round_up(n, 128))
    n_pad = _round_up(n, tile_n)
    x_t = jnp.pad(x.astype(jnp.bfloat16).T, ((0, 0), (0, n_pad - n)))

    thresh1 = int(round(p1 * (1 << 24)))
    thresh2 = int(round(p2 * (1 << 24)))
    kernel = functools.partial(fc_kernel, thresh1=thresh1, thresh2=thresh2,
                               tile_n=tile_n)

    const = lambda i: (0, 0)   # weights/biases stay resident across the grid
    out_row = pl.pallas_call(
        kernel,
        out_shape=jax.ShapeDtypeStruct((1, n_pad), jnp.float32),
        grid=(n_pad // tile_n,),
        in_specs=[
            pl.BlockSpec(memory_space=pltpu.SMEM),            # seed (1,) i32
            pl.BlockSpec(memory_space=pltpu.SMEM),            # b3   (1,) f32
            pl.BlockSpec((c_in, tile_n), lambda i: (0, i)),   # x_t (pipelined)
            pl.BlockSpec((h1, c_in), const),                  # w1
            pl.BlockSpec((h1, 1), const),                     # b1
            pl.BlockSpec((h2, h1), const),                    # w2
            pl.BlockSpec((h2, 1), const),                     # b2
            pl.BlockSpec((h2, 1), const),                     # w3 column
        ],
        out_specs=pl.BlockSpec((1, tile_n), lambda i: (0, i)),
        compiler_params=pltpu.CompilerParams(
            dimension_semantics=("parallel",),     # 2x TC sharding on v7x
            vmem_limit_bytes=32 * 1024 * 1024),    # explicit, v7x-safe
    )(seed_k, b3_k, x_t, w1_k, b1_k, w2_k, b2_k, w3_k)

    out = out_row[0, :n].reshape(n, 1)
    return out, None, None


def init_params(key, in_channels, hidden1=128, hidden2=64):
    """torch-nn.Linear-style init: U(-1/sqrt(fan_in), +1/sqrt(fan_in)),
    weights stored in torch layout (out_features, in_features)."""
    ks = jax.random.split(key, 6)

    def lin(kw, kb, fan_in, fan_out):
        bound = 1.0 / float(fan_in) ** 0.5
        w = jax.random.uniform(kw, (fan_out, fan_in), jnp.float32, -bound, bound)
        b = jax.random.uniform(kb, (fan_out,), jnp.float32, -bound, bound)
        return w, b

    w1, b1 = lin(ks[0], ks[1], in_channels, hidden1)
    w2, b2 = lin(ks[2], ks[3], hidden1, hidden2)
    w3, b3 = lin(ks[4], ks[5], hidden2, 1)
    return (w1, b1, w2, b2, w3, b3)


def _reference_no_dropout(x, params):
    w1, b1, w2, b2, w3, b3 = params
    h = jnp.maximum(x @ w1.T + b1, 0.0)
    h = jnp.maximum(h @ w2.T + b2, 0.0)
    z = h @ w3.T + b3
    return 1.0 / (1.0 + jnp.exp(-z))


if __name__ == "__main__":
    key = jax.random.PRNGKey(0)
    k_x, k_p = jax.random.split(key)

    N, C_IN = 8, 32
    x = jax.random.normal(k_x, (N, C_IN), dtype=jnp.float32)
    params = init_params(k_p, C_IN, hidden1=128, hidden2=64)
    seed = jnp.array([0], dtype=jnp.int32)

    # dropout-active forward (matches torch F.dropout's training=True default)
    out, _, _ = fc_forward(x, params, seed, p1=0.5, p2=0.2)
    out = jax.block_until_ready(out)
    assert out.shape == (N, 1)
    assert bool(jnp.all(jnp.isfinite(out)))
    assert bool(jnp.all((out >= 0.0) & (out <= 1.0)))

    # deterministic numerical check vs pure-JAX reference with dropout off
    out_nd, _, _ = fc_forward(x, params, seed, p1=0.0, p2=0.0)
    out_nd = jax.block_until_ready(out_nd)
    ref = _reference_no_dropout(x, params)
    assert bool(jnp.allclose(out_nd, ref, atol=3e-2, rtol=3e-2))

    print("KERNEL_OK")
</pallas_src>

<mosaic_0001>
module attributes {stable_mosaic.version = 11 : i64} {
  func.func @fc_kernel(%arg0: i32, %arg1: memref<1xi32, #tpu.memory_space<smem>>, %arg2: memref<1xf32, #tpu.memory_space<smem>>, %arg3: memref<32x128xbf16, #tpu.memory_space<vmem>>, %arg4: memref<128x32xbf16, #tpu.memory_space<vmem>>, %arg5: memref<128x1xf32, #tpu.memory_space<vmem>>, %arg6: memref<64x128xbf16, #tpu.memory_space<vmem>>, %arg7: memref<64x1xf32, #tpu.memory_space<vmem>>, %arg8: memref<64x1xf32, #tpu.memory_space<vmem>>, %arg9: memref<1x128xf32, #tpu.memory_space<vmem>>) attributes {dimension_semantics = [#tpu.dimension_semantics<parallel>], iteration_bounds = array<i64: 1>, scalar_prefetch = 0 : i64, scratch_operands = 0 : i64, tpu.core_type = #tpu.core_type<tc>, window_params = [{transform_indices = @transform_0, window_bounds = array<i64: 1>}, {transform_indices = @transform_1, window_bounds = array<i64: 1>}, {transform_indices = @transform_2, window_bounds = array<i64: 32, 128>}, {pipeline_mode = #tpu.pipeline_mode<synchronous>, transform_indices = @transform_3, window_bounds = array<i64: 128, 32>}, {pipeline_mode = #tpu.pipeline_mode<synchronous>, transform_indices = @transform_4, window_bounds = array<i64: 128, 1>}, {pipeline_mode = #tpu.pipeline_mode<synchronous>, transform_indices = @transform_5, window_bounds = array<i64: 64, 128>}, {pipeline_mode = #tpu.pipeline_mode<synchronous>, transform_indices = @transform_6, window_bounds = array<i64: 64, 1>}, {pipeline_mode = #tpu.pipeline_mode<synchronous>, transform_indices = @transform_7, window_bounds = array<i64: 64, 1>}, {transform_indices = @transform_8, window_bounds = array<i64: 1, 128>}]} {
    %c0 = arith.constant 0 : index
    %0 = memref.load %arg1[%c0] : memref<1xi32, #tpu.memory_space<smem>>
    %c128_i32 = arith.constant 128 : i32
    %1 = arith.muli %arg0, %c128_i32 : i32
    %c0_0 = arith.constant 0 : index
    %c0_1 = arith.constant 0 : index
    %2 = vector.load %arg3[%c0_0, %c0_1] : memref<32x128xbf16, #tpu.memory_space<vmem>>, vector<32x128xbf16>
    %c0_2 = arith.constant 0 : index
    %c0_3 = arith.constant 0 : index
    %3 = vector.load %arg4[%c0_2, %c0_3] : memref<128x32xbf16, #tpu.memory_space<vmem>>, vector<128x32xbf16>
    %cst = arith.constant dense<0.000000e+00> : vector<128x128xf32>
    %4 = tpu.matmul %3, %2, %cst {dimension_numbers = #tpu.dot_dimension_numbers<[1], [0], [0], [1], [0, 0, 1, 1], [], []>} : vector<128x32xbf16>, vector<32x128xbf16>, vector<128x128xf32> -> vector<128x128xf32>
    %c0_4 = arith.constant 0 : index
    %c0_5 = arith.constant 0 : index
    %5 = vector.load %arg5[%c0_4, %c0_5] : memref<128x1xf32, #tpu.memory_space<vmem>>, vector<128x1xf32>
    %6 = vector.broadcast %5 : vector<128x1xf32> to vector<128x128xf32>
    %7 = arith.addf %4, %6 : vector<128x128xf32>
    %8 = tpu.iota {dimensions = array<i32: 0>} : vector<128x128xi32>
    %9 = tpu.iota {dimensions = array<i32: 1>} : vector<128x128xi32>
    %10 = vector.broadcast %1 : i32 to vector<128x128xi32>
    %11 = arith.addi %9, %10 : vector<128x128xi32>
    %c19088743_i32 = arith.constant 19088743 : i32
    %12 = arith.addi %0, %c19088743_i32 : i32
    %c-1640531535_i32 = arith.constant -1640531535 : i32
    %13 = vector.broadcast %c-1640531535_i32 : i32 to vector<128x128xi32>
    %14 = arith.muli %8, %13 : vector<128x128xi32>
    %15 = vector.broadcast %12 : i32 to vector<128x128xi32>
    %16 = arith.addi %15, %14 : vector<128x128xi32>
    %c-2048144777_i32 = arith.constant -2048144777 : i32
    %17 = vector.broadcast %c-2048144777_i32 : i32 to vector<128x128xi32>
    %18 = arith.muli %11, %17 : vector<128x128xi32>
    %19 = arith.addi %16, %18 : vector<128x128xi32>
    %c16_i32 = arith.constant 16 : i32
    %20 = vector.broadcast %c16_i32 : i32 to vector<128x128xi32>
    %21 = arith.shrsi %19, %20 : vector<128x128xi32>
    %c65535_i32 = arith.constant 65535 : i32
    %22 = vector.broadcast %c65535_i32 : i32 to vector<128x128xi32>
    %23 = arith.andi %21, %22 : vector<128x128xi32>
    %24 = arith.xori %19, %23 : vector<128x128xi32>
    %c-2048144789_i32 = arith.constant -2048144789 : i32
    %25 = vector.broadcast %c-2048144789_i32 : i32 to vector<128x128xi32>
    %26 = arith.muli %24, %25 : vector<128x128xi32>
    %c13_i32 = arith.constant 13 : i32
    %27 = vector.broadcast %c13_i32 : i32 to vector<128x128xi32>
    %28 = arith.shrsi %26, %27 : vector<128x128xi32>
    %c524287_i32 = arith.constant 524287 : i32
    %29 = vector.broadcast %c524287_i32 : i32 to vector<128x128xi32>
    %30 = arith.andi %28, %29 : vector<128x128xi32>
    %31 = arith.xori %26, %30 : vector<128x128xi32>
    %c-1028477387_i32 = arith.constant -1028477387 : i32
    %32 = vector.broadcast %c-1028477387_i32 : i32 to vector<128x128xi32>
    %33 = arith.muli %31, %32 : vector<128x128xi32>
    %c16_i32_6 = arith.constant 16 : i32
    %34 = vector.broadcast %c16_i32_6 : i32 to vector<128x128xi32>
    %35 = arith.shrsi %33, %34 : vector<128x128xi32>
    %c65535_i32_7 = arith.constant 65535 : i32
    %36 = vector.broadcast %c65535_i32_7 : i32 to vector<128x128xi32>
    %37 = arith.andi %35, %36 : vector<128x128xi32>
    %38 = arith.xori %33, %37 : vector<128x128xi32>
    %c8_i32 = arith.constant 8 : i32
    %39 = vector.broadcast %c8_i32 : i32 to vector<128x128xi32>
    %40 = arith.shrsi %38, %39 : vector<128x128xi32>
    %c16777215_i32 = arith.constant 16777215 : i32
    %41 = vector.broadcast %c16777215_i32 : i32 to vector<128x128xi32>
    %42 = arith.andi %40, %41 : vector<128x128xi32>
    %c8388608_i32 = arith.constant 8388608 : i32
    %43 = vector.broadcast %c8388608_i32 : i32 to vector<128x128xi32>
    %44 = arith.cmpi sge, %42, %43 : vector<128x128xi32>
    %cst_8 = arith.constant 0.000000e+00 : f32
    %45 = vector.broadcast %cst_8 : f32 to vector<128x128xf32>
    %46 = arith.select %44, %7, %45 : vector<128x128xi1>, vector<128x128xf32>
    %cst_9 = arith.constant 0.000000e+00 : f32
    %47 = vector.broadcast %cst_9 : f32 to vector<128x128xf32>
    %48 = arith.maximumf %46, %47 : vector<128x128xf32>
    %c0_10 = arith.constant 0 : index
    %c0_11 = arith.constant 0 : index
    %49 = vector.load %arg6[%c0_10, %c0_11] : memref<64x128xbf16, #tpu.memory_space<vmem>>, vector<64x128xbf16>
    %50 = arith.truncf %48 : vector<128x128xf32> to vector<128x128xbf16>
    %cst_12 = arith.constant dense<0.000000e+00> : vector<64x128xf32>
    %51 = tpu.matmul %49, %50, %cst_12 {dimension_numbers = #tpu.dot_dimension_numbers<[1], [0], [0], [1], [0, 0, 1, 1], [], []>} : vector<64x128xbf16>, vector<128x128xbf16>, vector<64x128xf32> -> vector<64x128xf32>
    %c0_13 = arith.constant 0 : index
    %c0_14 = arith.constant 0 : index
    %52 = vector.load %arg7[%c0_13, %c0_14] : memref<64x1xf32, #tpu.memory_space<vmem>>, vector<64x1xf32>
    %53 = vector.broadcast %52 : vector<64x1xf32> to vector<64x128xf32>
    %54 = arith.addf %51, %53 : vector<64x128xf32>
    %55 = tpu.iota {dimensions = array<i32: 0>} : vector<64x128xi32>
    %56 = tpu.iota {dimensions = array<i32: 1>} : vector<64x128xi32>
    %57 = vector.broadcast %1 : i32 to vector<64x128xi32>
    %58 = arith.addi %56, %57 : vector<64x128xi32>
    %c124076833_i32 = arith.constant 124076833 : i32
    %59 = arith.addi %0, %c124076833_i32 : i32
    %c-1640531535_i32_15 = arith.constant -1640531535 : i32
    %60 = vector.broadcast %c-1640531535_i32_15 : i32 to vector<64x128xi32>
    %61 = arith.muli %55, %60 : vector<64x128xi32>
    %62 = vector.broadcast %59 : i32 to vector<64x128xi32>
    %63 = arith.addi %62, %61 : vector<64x128xi32>
    %c-2048144777_i32_16 = arith.constant -2048144777 : i32
    %64 = vector.broadcast %c-2048144777_i32_16 : i32 to vector<64x128xi32>
    %65 = arith.muli %58, %64 : vector<64x128xi32>
    %66 = arith.addi %63, %65 : vector<64x128xi32>
    %c16_i32_17 = arith.constant 16 : i32
    %67 = vector.broadcast %c16_i32_17 : i32 to vector<64x128xi32>
    %68 = arith.shrsi %66, %67 : vector<64x128xi32>
    %c65535_i32_18 = arith.constant 65535 : i32
    %69 = vector.broadcast %c65535_i32_18 : i32 to vector<64x128xi32>
    %70 = arith.andi %68, %69 : vector<64x128xi32>
    %71 = arith.xori %66, %70 : vector<64x128xi32>
    %c-2048144789_i32_19 = arith.constant -2048144789 : i32
    %72 = vector.broadcast %c-2048144789_i32_19 : i32 to vector<64x128xi32>
    %73 = arith.muli %71, %72 : vector<64x128xi32>
    %c13_i32_20 = arith.constant 13 : i32
    %74 = vector.broadcast %c13_i32_20 : i32 to vector<64x128xi32>
    %75 = arith.shrsi %73, %74 : vector<64x128xi32>
    %c524287_i32_21 = arith.constant 524287 : i32
    %76 = vector.broadcast %c524287_i32_21 : i32 to vector<64x128xi32>
    %77 = arith.andi %75, %76 : vector<64x128xi32>
    %78 = arith.xori %73, %77 : vector<64x128xi32>
    %c-1028477387_i32_22 = arith.constant -1028477387 : i32
    %79 = vector.broadcast %c-1028477387_i32_22 : i32 to vector<64x128xi32>
    %80 = arith.muli %78, %79 : vector<64x128xi32>
    %c16_i32_23 = arith.constant 16 : i32
    %81 = vector.broadcast %c16_i32_23 : i32 to vector<64x128xi32>
    %82 = arith.shrsi %80, %81 : vector<64x128xi32>
    %c65535_i32_24 = arith.constant 65535 : i32
    %83 = vector.broadcast %c65535_i32_24 : i32 to vector<64x128xi32>
    %84 = arith.andi %82, %83 : vector<64x128xi32>
    %85 = arith.xori %80, %84 : vector<64x128xi32>
    %c8_i32_25 = arith.constant 8 : i32
    %86 = vector.broadcast %c8_i32_25 : i32 to vector<64x128xi32>
    %87 = arith.shrsi %85, %86 : vector<64x128xi32>
    %c16777215_i32_26 = arith.constant 16777215 : i32
    %88 = vector.broadcast %c16777215_i32_26 : i32 to vector<64x128xi32>
    %89 = arith.andi %87, %88 : vector<64x128xi32>
    %c3355443_i32 = arith.constant 3355443 : i32
    %90 = vector.broadcast %c3355443_i32 : i32 to vector<64x128xi32>
    %91 = arith.cmpi sge, %89, %90 : vector<64x128xi32>
    %cst_27 = arith.constant 0.000000e+00 : f32
    %92 = vector.broadcast %cst_27 : f32 to vector<64x128xf32>
    %93 = arith.select %91, %54, %92 : vector<64x128xi1>, vector<64x128xf32>
    %cst_28 = arith.constant 0.000000e+00 : f32
    %94 = vector.broadcast %cst_28 : f32 to vector<64x128xf32>
    %95 = arith.maximumf %93, %94 : vector<64x128xf32>
    %c0_29 = arith.constant 0 : index
    %c0_30 = arith.constant 0 : index
    %96 = vector.load %arg8[%c0_29, %c0_30] : memref<64x1xf32, #tpu.memory_space<vmem>>, vector<64x1xf32>
    %97 = vector.broadcast %96 : vector<64x1xf32> to vector<64x128xf32>
    %98 = arith.mulf %95, %97 : vector<64x128xf32>
    %cst_31 = arith.constant dense<0.000000e+00> : vector<128xf32>
    %99 = vector.multi_reduction <add>, %98, %cst_31 [0] : vector<64x128xf32> to vector<128xf32>
    %100 = vector.shape_cast %99 : vector<128xf32> to vector<1x128xf32>
    %c0_32 = arith.constant 0 : index
    %101 = memref.load %arg2[%c0_32] : memref<1xf32, #tpu.memory_space<smem>>
    %102 = vector.broadcast %101 : f32 to vector<1x128xf32>
    %103 = arith.addf %100, %102 : vector<1x128xf32>
    %cst_33 = arith.constant 0.000000e+00 : f32
    %104 = vector.broadcast %cst_33 : f32 to vector<1x128xf32>
    %105 = arith.subf %104, %103 : vector<1x128xf32>
    %106 = math.exp %105 : vector<1x128xf32>
    %cst_34 = arith.constant 1.000000e+00 : f32
    %107 = vector.broadcast %cst_34 : f32 to vector<1x128xf32>
    %108 = arith.addf %107, %106 : vector<1x128xf32>
    %cst_35 = arith.constant 1.000000e+00 : f32
    %109 = vector.broadcast %cst_35 : f32 to vector<1x128xf32>
    %110 = arith.divf %109, %108 : vector<1x128xf32>
    %c0_36 = arith.constant 0 : index
    %c0_37 = arith.constant 0 : index
    %111 = vector.load %arg9[%c0_36, %c0_37] : memref<1x128xf32, #tpu.memory_space<vmem>>, vector<1x128xf32>
    tpu.vector_store %arg9[%c0_36, %c0_37], %110 {strides = array<i32>} : memref<1x128xf32, #tpu.memory_space<vmem>>, vector<1x128xf32>,
    return
  }
  func.func @transform_0(%arg0: i32) -> i32 {
    %c0_i32 = arith.constant 0 : i32
    %c0_i32_0 = arith.constant 0 : i32
    return %c0_i32 : i32
  }
  func.func @transform_1(%arg0: i32) -> i32 {
    %c0_i32 = arith.constant 0 : i32
    %c0_i32_0 = arith.constant 0 : i32
    return %c0_i32 : i32
  }
  func.func @transform_2(%arg0: i32) -> (i32, i32) {
    %c0_i32 = arith.constant 0 : i32
    %c0_i32_0 = arith.constant 0 : i32
    return %c0_i32, %arg0 : i32, i32
  }
  func.func @transform_3(%arg0: i32) -> (i32, i32) {
    %c0_i32 = arith.constant 0 : i32
    %c0_i32_0 = arith.constant 0 : i32
    %c0_i32_1 = arith.constant 0 : i32
    return %c0_i32, %c0_i32_0 : i32, i32
  }
  func.func @transform_4(%arg0: i32) -> (i32, i32) {
    %c0_i32 = arith.constant 0 : i32
    %c0_i32_0 = arith.constant 0 : i32
    %c0_i32_1 = arith.constant 0 : i32
    return %c0_i32, %c0_i32_0 : i32, i32
  }
  func.func @transform_5(%arg0: i32) -> (i32, i32) {
    %c0_i32 = arith.constant 0 : i32
    %c0_i32_0 = arith.constant 0 : i32
    %c0_i32_1 = arith.constant 0 : i32
    return %c0_i32, %c0_i32_0 : i32, i32
  }
  func.func @transform_6(%arg0: i32) -> (i32, i32) {
    %c0_i32 = arith.constant 0 : i32
    %c0_i32_0 = arith.constant 0 : i32
    %c0_i32_1 = arith.constant 0 : i32
    return %c0_i32, %c0_i32_0 : i32, i32
  }
  func.func @transform_7(%arg0: i32) -> (i32, i32) {
    %c0_i32 = arith.constant 0 : i32
    %c0_i32_0 = arith.constant 0 : i32
    %c0_i32_1 = arith.constant 0 : i32
    return %c0_i32, %c0_i32_0 : i32, i32
  }
  func.func @transform_8(%arg0: i32) -> (i32, i32) {
    %c0_i32 = arith.constant 0 : i32
    %c0_i32_0 = arith.constant 0 : i32
    return %c0_i32, %arg0 : i32, i32
  }
}

</mosaic_0001>

<bundles_post_ra>
// kernel: tpu_custom_call.1
= control target key start
LH: loop header
LB: loop body
LE: loop exit
PB: predicated region body
PF: predicated region fallthrough
CT: control target
= control target key end

     0   :  { %vm203_vm0 = vcmask 261120   ;;  %v1275_v3 = vmov 0   ;;  %s1760_s0 = inlined_call_operand.<no memory space> [shape: s32[1], index: 0, kind: input, shape index: {}]   ;;  %s1761_s1 = inlined_call_operand.<no memory space> [shape: f32[1], index: 1, kind: input, shape index: {}]   ;;  %s1762_s2 = inlined_call_operand.vmem [shape: bf16[32,128], index: 2, kind: input, shape index: {}]   ;;  %s1763_s3 = inlined_call_operand.vmem [shape: bf16[128,32], index: 3, kind: input, shape index: {}]   ;;  %s1764_s4 = inlined_call_operand.vmem [shape: f32[128,1], index: 4, kind: input, shape index: {}]   ;;  %s1765_s5 = inlined_call_operand.vmem [shape: bf16[64,128], index: 5, kind: input, shape index: {}]   ;;  %s1766_s6 = inlined_call_operand.vmem [shape: f32[64,1], index: 6, kind: input, shape index: {}]   ;;  %s1767_s7 = inlined_call_operand.vmem [shape: f32[64,1], index: 7, kind: input, shape index: {}]   ;;  %s1768_s8 = inlined_call_operand.hbm [shape: f32[1,128], index: 8, kind: output, shape index: {}]  }
   0x1   :  { %v1233_v0 = vld [vmem:[%s1762_s2] sm:$0xff]   ;;  %v1234_v1 = vld [vmem:[%s1762_s2 + $0x8] sm:$0xff]   ;;  %1231 = vset.pattern.permute.xlu0 %v1275_v3  ;;  %1232 = vset.pattern.permute.xlu1 %v1275_v3  ;;  %v1237_v5 = vld [vmem:[%s1763_s3 + $0x10] sm:$0xff]  }
   0x2   :  { %1185 = vmatprep.subr.bf16.mxu0 %v1233_v0  ;;  %v1235_v2 = vld [vmem:[%s1763_s3] sm:$0xff]   ;;  %v1236_v4 = vld [vmem:[%s1763_s3 + $0x8] sm:$0xff]   ;;  %v57_v7 = vld [vmem:[%s1764_s4 + $0x10] sm:$0xff] }
   0x3   :  { %1186 = vmatpush3.bf16.msra.mxu0 %v1233_v0  ;;  %1189 = vmatprep.mubr.msk.bf16.mxu0 %vm203_vm0, %v1235_v2  ;;  %v55_v6 = vld [vmem:[%s1764_s4] sm:$0xff]  ;;  %v56_v8 = vld [vmem:[%s1764_s4 + $0x8] sm:$0xff]  ;;  %v58_v9 = vld [vmem:[%s1764_s4 + $0x18] sm:$0xff] }
   0x4   :  { %1187 = vmatprep.subr.bf16.mxu0 %v1234_v1  ;;  %73 = vperm.xlu0 %1231, %v55_v6   ;;  %v1238_v10 = vld [vmem:[%s1763_s3 + $0x18] sm:$0xff]   ;;  %v59_v11 = vld [vmem:[%s1764_s4 + $0x20] sm:$0xff]  ;;  %v60_v13 = vld [vmem:[%s1764_s4 + $0x28] sm:$0xff] }
   0x5   :  { %83 = vperm.xlu1 %1232, %v57_v7   ;;  %v1239_v12 = vld [vmem:[%s1763_s3 + $0x20] sm:$0xff]   ;;  %v61_v14 = vld [vmem:[%s1764_s4 + $0x30] sm:$0xff]  ;;  %v1240_v15 = vld [vmem:[%s1763_s3 + $0x28] sm:$0xff]  }
   0x6   :  { %v62_v16 = vld [vmem:[%s1764_s4 + $0x38] sm:$0xff]  ;;  %v63_v17 = vld [vmem:[%s1764_s4 + $0x40] sm:$0xff]  ;;  %v1241_v18 = vld [vmem:[%s1763_s3 + $0x30] sm:$0xff]  }
   0x7   :  { %1188 = vmatpush3.bf16.msra.mxu0 %v1234_v1 }
   0x8   :  { %78 = vperm.xlu0 %1231, %v56_v8  }
   0x9   :  { %88 = vperm.xlu1 %1232, %v58_v9  }
   0xa   :  { %1190 = vmatmul.mubr.msk.bf16.vlgmr.msra.gmra.mrb[0].mxu0 %vm203_vm0, %v1236_v4 }
   0xb   :  { %1193 = vmatprep.mubr.msk.bf16.mxu0 %vm203_vm0, %v1237_v5 }
   0xc   :  { %93 = vperm.xlu0 %1231, %v59_v11  }
   0xd   :  { %98 = vperm.xlu1 %1232, %v60_v13  }
  0x10   :  { %103 = vperm.xlu0 %1231, %v61_v14  }
  0x11   :  { %108 = vperm.xlu1 %1232, %v62_v16  }
  0x12   :  { %1194 = vmatmul.mubr.msk.bf16.gmra.mrb[4].mxu0 %vm203_vm0, %v1238_v10 }
  0x13   :  { %1197 = vmatprep.mubr.msk.bf16.mxu0 %vm203_vm0, %v1239_v12 }
  0x14   :  { %15 = vsyncpa [#allocation5], 0  ;;  %v64_v19 = vld [vmem:[%s1764_s4 + $0x48] sm:$0xff]  ;;  %113 = vperm.xlu0 %1231, %v63_v17   ;;  %v65_v20 = vld [vmem:[%s1764_s4 + $0x50] sm:$0xff]  ;;  %v325_v44 = vlaneseq  ;;  %s806_s26 = sadd.s32 124076833, %s1760_s0 }
  0x15   :  { %118 = vperm.xlu1 %1232, %v64_v19   ;;  %v66_v21 = vld [vmem:[%s1764_s4 + $0x58] sm:$0xff]  ;;  %v67_v23 = vld [vmem:[%s1764_s4 + $0x60] sm:$0xff]  ;;  %v68_v24 = vld [vmem:[%s1764_s4 + $0x68] sm:$0xff]  ;;  %s1276_s27 = smov [#allocation4]  }
  0x16   :  { %v1242_v22 = vld [vmem:[%s1763_s3 + $0x38] sm:$0xff]   ;;  %v69_v25 = vld [vmem:[%s1764_s4 + $0x70] sm:$0xff]  ;;  %v669_v27 = vld [vmem:[%s1766_s6] sm:$0xff]  ;;  %v1459_v45 = vshrl.u32 %v325_v44, 7  ;;  %v343_v50 = vand.u32 127, %v325_v44  ;;  %s1037_s28 = sshll.u32 %s1276_s27, 4  ;;  %s1038_s28 = int_to_ptr.vmem [resolvable:$true] %s1037_s28 }
  0x17   :  { %v70_v26 = vld [vmem:[%s1764_s4 + $0x78] sm:$0xff]  ;;  %v670_v28 = vld [vmem:[%s1766_s6 + $0x8] sm:$0xff]  ;;  %v671_v29 = vld [vmem:[%s1766_s6 + $0x10] sm:$0xff]  ;;  %s1251_s29 = scalar_lea.vmem %s1038_s28, 16  ;;  %s1255_s30 = scalar_lea.vmem %s1038_s28, 32 }
  0x18   :  { %123 = vperm.xlu0 %1231, %v65_v20   ;;  %v672_v30 = vld [vmem:[%s1766_s6 + $0x18] sm:$0xff]  ;;  %v952_v31 = vld [vmem:[%s1767_s7] sm:$0xff]  ;;  %v953_v32 = vld [vmem:[%s1767_s7 + $0x8] sm:$0xff]  ;;  %v1462_v46 = vadd.s32 16, %v1459_v45  ;;  %v1465_v47 = vadd.s32 24, %v1459_v45  ;;  %v1471_v48 = vadd.s32 8, %v1459_v45  ;;  %p1252_p0 = scmp.ne.s32.totalorder %s1038_s28, %s1251_s29  ;;  %p1256_p1 = scmp.lt.s32.totalorder %s1038_s28, %s1038_s28 }
  0x19   :  { %128 = vperm.xlu1 %1232, %v66_v21   ;;  %v673_v33 = vld [vmem:[%s1766_s6 + $0x20] sm:$0xff]  ;;  %v954_v34 = vld [vmem:[%s1767_s7 + $0x10] sm:$0xff]  ;;  %v674_v35 = vld [vmem:[%s1766_s6 + $0x28] sm:$0xff]  ;;  %v1474_v49 = vadd.s32 48, %v1459_v45  ;;  %v347_v53 = vmul.u32 2654435761, %v1459_v45  ;;  %p1257_p2 = scmp.lt.s32.totalorder %s1255_s30, %s1251_s29 }
  0x1a   :  { %1198 = vmatmul.mubr.msk.bf16.gmra.mrb[8].mxu0 %vm203_vm0, %v1240_v15  ;;  %v955_v36 = vld [vmem:[%s1767_s7 + $0x18] sm:$0xff]  ;;  %v675_v37 = vld [vmem:[%s1766_s6 + $0x30] sm:$0xff]  ;;  %v956_v38 = vld [vmem:[%s1767_s7 + $0x20] sm:$0xff]  ;;  %v349_v51 = vmul.u32 2654435761, %v1462_v46  ;;  %v1482_v55 = vadd.s32 32, %v1459_v45 }
  0x1b   :  { %1201 = vmatprep.mubr.msk.bf16.mxu0 %vm203_vm0, %v1241_v18  ;;  %v676_v39 = vld [vmem:[%s1766_s6 + $0x38] sm:$0xff]  ;;  %v957_v40 = vld [vmem:[%s1767_s7 + $0x28] sm:$0xff]  ;;  %v958_v41 = vld [vmem:[%s1767_s7 + $0x30] sm:$0xff]  ;;  %v350_v54 = vmul.u32 2654435761, %v1465_v47  ;;  %v1492_v60 = vadd.s32 56, %v1459_v45  ;;  %p1258_p3 = por %p1257_p2, %p1256_p1 }
  0x1c   :  { %133 = vperm.xlu0 %1231, %v67_v23   ;;  %v959_v42 = vld [vmem:[%s1767_s7 + $0x38] sm:$0xff]  ;;  %v1243_v43 = vld [vmem:[%s1765_s5] sm:$0xff]   ;;  %s346_s7 = sadd.s32 19088743, %s1760_s0  ;;  %v348_v56 = vmul.u32 2654435761, %v1471_v48 }
  0x1d   :  { %138 = vperm.xlu1 %1232, %v68_v24   ;;  %1221 = vmatprep.mubr.bf16.mxu1 %v1243_v43  ;;  %v1477_v52 = vstv %s346_s7  ;;  %v353_v57 = vmul.u32 2654435761, %v1474_v49  ;;  %v1489_v59 = vmul.u32 2246822519, %v343_v50  ;;  %v1508_v2 = vadd.s32 40, %v1459_v45  ;;  %p1259_p4 = pnand %p1258_p3, %p1252_p0 }
  0x1e   :  { %v366_v58 = vadd.s32 %v1477_v52, %v349_v51  ;;  %v364_v61 = vadd.s32 %v1477_v52, %v347_v53  ;;  %v367_v62 = vadd.s32 %v1477_v52, %v350_v54  ;;  %v351_v63 = vmul.u32 2654435761, %v1482_v55 }
  0x1f   :  { %v365_v0 = vadd.s32 %v1477_v52, %v348_v56  ;;  %v370_v1 = vadd.s32 %v1477_v52, %v353_v57  ;;  %v354_v4 = vmul.u32 2654435761, %v1492_v60  ;;  %v352_v10 = vmul.u32 2654435761, %v1508_v2 }
  0x20   :  { %143 = vperm.xlu0 %1231, %v69_v25   ;;  %v383_v3 = vadd.s32 %v1489_v59, %v366_v58  ;;  %v381_v5 = vadd.s32 %v1489_v59, %v364_v61  ;;  %v384_v6 = vadd.s32 %v1489_v59, %v367_v62  ;;  %v368_v7 = vadd.s32 %v1477_v52, %v351_v63 }
  0x21   :  { %148 = vperm.xlu1 %1232, %v70_v26   ;;  %v382_v8 = vadd.s32 %v1489_v59, %v365_v0  ;;  %v387_v9 = vadd.s32 %v1489_v59, %v370_v1  ;;  %v371_v12 = vadd.s32 %v1477_v52, %v354_v4  ;;  %v336_v16 = vadd.s32 80, %v1459_v45 }
  0x22   :  { %1202 = vmatmul.mubr.msk.bf16.gmra.mrb[12].mxu0 %vm203_vm0, %v1242_v22  ;;  %v1065_v11 = vshrl.u32 %v383_v3, 16  ;;  %v1063_v13 = vshrl.u32 %v381_v5, 16  ;;  %v1066_v14 = vshrl.u32 %v384_v6, 16  ;;  %v385_v15 = vadd.s32 %v1489_v59, %v368_v7 }
  0x23   :  { %v1064_v17 = vshrl.u32 %v382_v8, 16  ;;  %v1069_v18 = vshrl.u32 %v387_v9, 16  ;;  %v369_v19 = vadd.s32 %v1477_v52, %v352_v10  ;;  %v334_v20 = vadd.s32 64, %v1459_v45 }
  0x24   :  { %679 = vperm.xlu0 %1231, %v669_v27   ;;  %v431_v21 = vxor.u32 %v1065_v11, %v383_v3  ;;  %v388_v22 = vadd.s32 %v1489_v59, %v371_v12  ;;  %v337_v23 = vadd.s32 88, %v1459_v45  ;;  %v429_v24 = vxor.u32 %v1063_v13, %v381_v5 }
  0x25   :  { %684 = vperm.xlu1 %1232, %v670_v28   ;;  %v432_v25 = vxor.u32 %v1066_v14, %v384_v6  ;;  %v1067_v26 = vshrl.u32 %v385_v15, 16  ;;  %v357_v27 = vmul.u32 2654435761, %v336_v16  ;;  %v430_v28 = vxor.u32 %v1064_v17, %v382_v8 }
  0x26   :  { %v340_v50 = vadd.s32 112, %v1459_v45  ;;  %v338_v0 = vadd.s32 96, %v1459_v45  ;;  %v341_v6 = vadd.s32 120, %v1459_v45  ;;  %v339_v11 = vadd.s32 104, %v1459_v45 }
  0x28   :  { %689 = vperm.xlu0 %1231, %v671_v29   ;;  %v335_v29 = vadd.s32 72, %v1459_v45 }
  0x29   :  { %694 = vperm.xlu1 %1232, %v672_v30   ;;  %v435_v30 = vxor.u32 %v1069_v18, %v387_v9 }
  0x2c   :  { %962 = vperm.xlu0 %1231, %v952_v31   ;;  %v386_v31 = vadd.s32 %v1489_v59, %v369_v19  ;;  %v359_v19 = vmul.u32 2654435761, %v338_v0 }
  0x2d   :  { %967 = vperm.xlu1 %1232, %v953_v32   ;;  %v355_v32 = vmul.u32 2654435761, %v334_v20 }
  0x2e   :  { %v1068_v43 = vshrl.u32 %v386_v31, 16 }
  0x2f   :  { %v372_v44 = vadd.s32 %v1477_v52, %v355_v32 }
  0x30   :  { %699 = vperm.xlu0 %1231, %v673_v33   ;;  %v447_v33 = vmul.u32 2246822507, %v431_v21  ;;  %v434_v13 = vxor.u32 %v1068_v43, %v386_v31 }
  0x31   :  { %972 = vperm.xlu1 %1232, %v954_v34   ;;  %v1070_v34 = vshrl.u32 %v388_v22, 16  ;;  %v389_v14 = vadd.s32 %v1489_v59, %v372_v44 }
  0x32   :  { %v1081_v58 = vshrl.u32 %v447_v33, 13 }
  0x33   :  { %v436_v61 = vxor.u32 %v1070_v34, %v388_v22 }
  0x34   :  { %704 = vperm.xlu0 %1231, %v674_v35   ;;  %v358_v35 = vmul.u32 2654435761, %v337_v23  ;;  %v495_v16 = vxor.u32 %v1081_v58, %v447_v33  ;;  %v362_v23 = vmul.u32 2654435761, %v341_v6 }
  0x35   :  { %977 = vperm.xlu1 %1232, %v955_v36   ;;  %v445_v36 = vmul.u32 2246822507, %v429_v24  ;;  %v452_v17 = vmul.u32 2246822507, %v436_v61 }
  0x36   :  { %v375_v62 = vadd.s32 %v1477_v52, %v358_v35  ;;  %v511_v32 = vmul.u32 3266489909, %v495_v16  ;;  %v376_v35 = vadd.s32 %v1477_v52, %v359_v19 }
  0x37   :  { %v1079_v1 = vshrl.u32 %v445_v36, 13  ;;  %v1086_v33 = vshrl.u32 %v452_v17, 13 }
  0x38   :  { %709 = vperm.xlu0 %1231, %v675_v37   ;;  %v448_v37 = vmul.u32 2246822507, %v432_v25  ;;  %v392_v18 = vadd.s32 %v1489_v59, %v375_v62 }
  0x39   :  { %982 = vperm.xlu1 %1232, %v956_v38   ;;  %v433_v38 = vxor.u32 %v1067_v26, %v385_v15  ;;  %v361_v15 = vmul.u32 2654435761, %v340_v50  ;;  %v493_v20 = vxor.u32 %v1079_v1, %v445_v36  ;;  %v1097_v1 = vshrl.u32 %v511_v32, 16 }
  0x3a   :  { %v1082_v7 = vshrl.u32 %v448_v37, 13  ;;  %v1074_v34 = vshrl.u32 %v392_v18, 16  ;;  %v500_v6 = vxor.u32 %v1086_v33, %v452_v17 }
  0x3b   :  { %v449_v3 = vmul.u32 2246822507, %v433_v38  ;;  %v378_v31 = vadd.s32 %v1477_v52, %v361_v15  ;;  %v509_v36 = vmul.u32 3266489909, %v493_v20  ;;  %v559_v17 = vxor.u32 %v1097_v1, %v511_v32 }
  0x3c   :  { %714 = vperm.xlu0 %1231, %v676_v39   ;;  %v374_v39 = vadd.s32 %v1477_v52, %v357_v27  ;;  %v496_v24 = vxor.u32 %v1082_v7, %v448_v37  ;;  %v360_v27 = vmul.u32 2654435761, %v339_v11  ;;  %v379_v37 = vadd.s32 %v1477_v52, %v362_v23 }
  0x3d   :  { %987 = vperm.xlu1 %1232, %v957_v40   ;;  %v446_v40 = vmul.u32 2246822507, %v430_v28  ;;  %v1083_v21 = vshrl.u32 %v449_v3, 13  ;;  %v395_v0 = vadd.s32 %v1489_v59, %v378_v31  ;;  %v440_v7 = vxor.u32 %v1074_v34, %v392_v18 }
  0x3e   :  { %v391_v5 = vadd.s32 %v1489_v59, %v374_v39  ;;  %v396_v11 = vadd.s32 %v1489_v59, %v379_v37  ;;  %v516_v18 = vmul.u32 3266489909, %v500_v6 }
  0x3f   :  { %v1080_v8 = vshrl.u32 %v446_v40, 13  ;;  %v497_v39 = vxor.u32 %v1083_v21, %v449_v3  ;;  %v393_v3 = vadd.s32 %v1489_v59, %v376_v35  ;;  %v1077_v21 = vshrl.u32 %v395_v0, 16 }
  0x40   :  { %992 = vperm.xlu0 %1231, %v958_v41   ;;  %v356_v41 = vmul.u32 2654435761, %v335_v29  ;;  %v1073_v22 = vshrl.u32 %v391_v5, 16  ;;  %v450_v29 = vmul.u32 2246822507, %v434_v13 }
  0x41   :  { %997 = vperm.xlu1 %1232, %v959_v42   ;;  %v451_v42 = vmul.u32 2246822507, %v435_v30  ;;  %v494_v25 = vxor.u32 %v1080_v8, %v446_v40  ;;  %v1071_v30 = vshrl.u32 %v389_v14, 16  ;;  %v512_v40 = vmul.u32 3266489909, %v496_v24 }
  0x42   :  { %v373_v9 = vadd.s32 %v1477_v52, %v356_v41  ;;  %v439_v41 = vxor.u32 %v1073_v22, %v391_v5  ;;  %v1084_v61 = vshrl.u32 %v450_v29, 13  ;;  %v1095_v5 = vshrl.u32 %v509_v36, 16 }
  0x43   :  { %v1085_v12 = vshrl.u32 %v451_v42, 13  ;;  %v510_v43 = vmul.u32 3266489909, %v494_v25  ;;  %v437_v62 = vxor.u32 %v1071_v30, %v389_v14  ;;  %v513_v8 = vmul.u32 3266489909, %v497_v39 }
  0x44   :  { %v390_v26 = vadd.s32 %v1489_v59, %v373_v9  ;;  %v455_v9 = vmul.u32 2246822507, %v439_v41  ;;  %v498_v19 = vxor.u32 %v1084_v61, %v450_v29  ;;  %v456_v22 = vmul.u32 2246822507, %v440_v7 }
  0x45   :  { %v499_v28 = vxor.u32 %v1085_v12, %v451_v42  ;;  %v377_v42 = vadd.s32 %v1477_v52, %v360_v27  ;;  %v1098_v12 = vshrl.u32 %v512_v40, 16  ;;  %v1096_v13 = vshrl.u32 %v510_v43, 16 }
  0x46   :  { %v1072_v44 = vshrl.u32 %v390_v26, 16  ;;  %v453_v20 = vmul.u32 2246822507, %v437_v62  ;;  %v1075_v23 = vshrl.u32 %v393_v3, 16  ;;  %v557_v25 = vxor.u32 %v1095_v5, %v509_v36 }
  0x47   :  { %v515_v58 = vmul.u32 3266489909, %v499_v28  ;;  %v394_v15 = vadd.s32 %v1489_v59, %v377_v42  ;;  %v1099_v27 = vshrl.u32 %v513_v8, 16  ;;  %v1089_v28 = vshrl.u32 %v455_v9, 13 }
  0x48   :  { %v438_v52 = vxor.u32 %v1072_v44, %v390_v26  ;;  %v1078_v30 = vshrl.u32 %v396_v11, 16  ;;  %v560_v31 = vxor.u32 %v1098_v12, %v512_v40  ;;  %v558_v33 = vxor.u32 %v1096_v13, %v510_v43 }
  0x49   :  { %v1101_v14 = vshrl.u32 %v515_v58, 16  ;;  %v1076_v34 = vshrl.u32 %v394_v15, 16  ;;  %v514_v39 = vmul.u32 3266489909, %v498_v19  ;;  %v1087_v41 = vshrl.u32 %v453_v20, 13 }
  0x4a   :  { %v454_v26 = vmul.u32 2246822507, %v438_v52  ;;  %v443_v37 = vxor.u32 %v1077_v21, %v395_v0  ;;  %v1113_v29 = vshrl.u32 %v559_v17, 8  ;;  %v1102_v44 = vshrl.u32 %v516_v18, 16 }
  0x4b   :  { %v563_v35 = vxor.u32 %v1101_v14, %v515_v58  ;;  %v1090_v42 = vshrl.u32 %v456_v22, 13  ;;  %v441_v32 = vxor.u32 %v1075_v23, %v393_v3  ;;  %v1111_v62 = vshrl.u32 %v557_v25, 8 }
  0x4c   :  { %v561_v1 = vxor.u32 %v1099_v27, %v513_v8  ;;  %v1561_v36 = vxor.u32 %v1089_v28, %v455_v9  ;;  %v444_v6 = vxor.u32 %v1078_v30, %v396_v11  ;;  %v1114_v7 = vshrl.u32 %v560_v31, 8 }
  0x4d   :  { %v1112_v40 = vshrl.u32 %v558_v33, 8  ;;  %v1088_v43 = vshrl.u32 %v454_v26, 13  ;;  %v442_v5 = vxor.u32 %v1076_v34, %v394_v15  ;;  %v1117_v58 = vshrl.u32 %v563_v35, 8 }
  0x4e   :  { %v1100_v13 = vshrl.u32 %v514_v39, 16  ;;  %v501_v0 = vxor.u32 %v1087_v41, %v453_v20  ;;  %v459_v52 = vmul.u32 2246822507, %v443_v37  ;;  %vm1565_vm1 = vcmp.ge.s32.totalorder %v1113_v29, 8388608 }
  0x4f   :  { %v1569_v3 = vxor.u32 %v1102_v44, %v516_v18  ;;  %v504_v8 = vxor.u32 %v1090_v42, %v456_v22  ;;  %v457_v9 = vmul.u32 2246822507, %v441_v32  ;;  %vm1571_vm2 = vcmp.ge.s32.totalorder %v1111_v62, 8388608 }
  0x50   :  { %v1115_v19 = vshrl.u32 %v561_v1, 8  ;;  %v519_v15 = vmul.u32 3266489909, %v1561_v36  ;;  %v460_v21 = vmul.u32 2246822507, %v444_v6  ;;  %vm1576_vm3 = vcmp.ge.s32.totalorder %v1114_v7, 8388608 }
  0x51   :  { %vm1580_vm4 = vcmp.ge.s32.totalorder %v1112_v40, 8388608  ;;  %v502_v18 = vxor.u32 %v1088_v43, %v454_v26  ;;  %v458_v23 = vmul.u32 2246822507, %v442_v5  ;;  %vm1584_vm5 = vcmp.ge.s32.totalorder %v1117_v58, 8388608 }
  0x52   :  { %v562_v28 = vxor.u32 %v1100_v13, %v514_v39  ;;  %v517_v30 = vmul.u32 3266489909, %v501_v0  ;;  %v1093_v31 = vshrl.u32 %v459_v52, 13  ;;  %v1118_v35 = vshrl.u32 %v1569_v3, 8 }
  0x53   :  { %v520_v41 = vmul.u32 3266489909, %v504_v8  ;;  %v1091_v37 = vshrl.u32 %v457_v9, 13  ;;  %vm1591_vm6 = vcmp.ge.s32.totalorder %v1115_v19, 8388608  ;;  %v1105_v32 = vshrl.u32 %v519_v15, 16 }
  0x54   :  { %v1094_v62 = vshrl.u32 %v460_v21, 13  ;;  %v518_v36 = vmul.u32 3266489909, %v502_v18  ;;  %v1092_v6 = vshrl.u32 %v458_v23, 13  ;;  %v507_v43 = vxor.u32 %v1093_v31, %v459_v52 }
  0x55   :  { %v1116_v58 = vshrl.u32 %v562_v28, 8  ;;  %v1106_v13 = vshrl.u32 %v520_v41, 16  ;;  %v505_v0 = vxor.u32 %v1091_v37, %v457_v9  ;;  %v567_v31 = vxor.u32 %v1105_v32, %v519_v15 }
  0x56   :  { %v508_v19 = vxor.u32 %v1094_v62, %v460_v21  ;;  %vm1609_vm7 = vcmp.ge.s32.totalorder %v1118_v35, 8388608 }
  0x57   :  { %vm1613_vm8 = vcmp.ge.s32.totalorder %v1116_v58, 8388608 }
  0x83   :  { %v1547_v38 = vpop.permute.xlu0 %73 }
  0x84   :  { %v1551_v50 = vpop.permute.xlu1 %83 }
  0x87   :  { %v1557_v16 = vpop.permute.xlu0 %78 }
  0x88   :  { %v89_v24 = vpop.permute.xlu1 %88 }
  0x8b   :  { %v1559_v61 = vpop.permute.xlu0 %93 }
  0x8c   :  { %v1563_v12 = vpop.permute.xlu1 %98 }
  0x8f   :  { %v104_v22 = vpop.permute.xlu0 %103 }
  0x90   :  { %v109_v29 = vpop.permute.xlu1 %108 }
  0x93   :  { %v114_v3 = vpop.permute.xlu0 %113 }
  0xdd   :  { %v1191_v25 = vpop.f32.mrb[0].mxu0 }
  0xde   :  { %v271_v33 = vadd.f32 %v1191_v25, %v1551_v50  ;;  %v262_v34 = vpop.f32.mrb[1].mxu0  ;;  %v1104_v25 = vshrl.u32 %v518_v36, 16 }
  0xdf   :  { %v263_v26 = vadd.f32 %v262_v34, %v1547_v38  ;;  %v1192_v44 = vpop.f32.mrb[2].mxu0  ;;  %v1103_v38 = vshrl.u32 %v517_v30, 16  ;;  %v523_v34 = vmul.u32 3266489909, %v507_v43 }
  0xe0   :  { %v623_v39 = vsel %vm1565_vm1, %v271_v33, 0.0  ;;  %v274_v1 = vadd.f32 %v1192_v44, %v89_v24  ;;  %v265_v50 = vpop.f32.mrb[3].mxu0  ;;  %v1604_v33 = vxor.u32 %v1092_v6, %v458_v23  ;;  %v568_v44 = vxor.u32 %v1106_v13, %v520_v41 }
  0xe1   :  { %v621_v7 = vsel %vm1571_vm2, %v263_v26, 0.0  ;;  %v266_v40 = vadd.f32 %v265_v50, %v1557_v16  ;;  %v639_v14 = vmax.f32 %v623_v39, 0.0  ;;  %v1606_v16 = vpop.permute.xlu1 %118  ;;  %v565_v28 = vxor.u32 %v1103_v38, %v517_v30 }
  0xe2   :  { %v624_v5 = vsel %vm1576_vm3, %v274_v1, 0.0  ;;  %v637_v18 = vmax.f32 %v621_v7, 0.0  ;;  %v521_v39 = vmul.u32 3266489909, %v505_v0  ;;  %v524_v1 = vmul.u32 3266489909, %v508_v19 }
  0xe3   :  { %v640_v8 = vmax.f32 %v624_v5, 0.0  ;;  %v622_v24 = vsel %vm1580_vm4, %v266_v40, 0.0  ;;  %v566_v41 = vxor.u32 %v1104_v25, %v518_v36  ;;  %v522_v32 = vmul.u32 3266489909, %v1604_v33 }
  0xe4   :  { %v638_v11 = vmax.f32 %v622_v24, 0.0  ;;  %v1121_v6 = vshrl.u32 %v567_v31, 8  ;;  %v1109_v7 = vshrl.u32 %v523_v34, 16  ;;  %v1119_v27 = vshrl.u32 %v565_v28, 8 }
  0xe5   :  { %v1195_v52 = vpop.f32.mrb[4].mxu0  ;;  %v662_v17 = vpack.c.bf16 %v640_v8, %v639_v14  ;;  %v1107_v38 = vshrl.u32 %v521_v39, 16  ;;  %v129_v43 = vpop.permute.xlu1 %128  ;;  %v1110_v42 = vshrl.u32 %v524_v1, 16  ;;  %v1108_v14 = vshrl.u32 %v522_v32, 16 }
  0xe6   :  { %v287_v9 = vadd.f32 %v1195_v52, %v104_v22  ;;  %v278_v37 = vpop.f32.mrb[5].mxu0  ;;  %v661_v26 = vpack.c.bf16 %v638_v11, %v637_v18  ;;  %vm1627_vm9 = vcmp.ge.s32.totalorder %v1121_v6, 8388608  ;;  %v571_v18 = vxor.u32 %v1109_v7, %v523_v34 }
  0xe7   :  { %v279_v20 = vadd.f32 %v278_v37, %v1559_v61  ;;  %v1196_v21 = vpop.f32.mrb[6].mxu0  ;;  %v124_v61 = vpop.permute.xlu0 %123  ;;  %vm1631_vm10 = vcmp.ge.s32.totalorder %v1119_v27, 8388608  ;;  %v569_v31 = vxor.u32 %v1107_v38, %v521_v39  ;;  %v570_v62 = vxor.u32 %v1108_v14, %v522_v32 }
  0xe8   :  { %v627_v15 = vsel %vm1584_vm5, %v287_v9, 0.0  ;;  %v290_v22 = vadd.f32 %v1196_v21, %v109_v29  ;;  %v281_v30 = vpop.f32.mrb[7].mxu0  ;;  %1205 = vmatprep.subr.bf16.mxu1 %v661_v26  ;;  %v1122_v29 = vshrl.u32 %v568_v44, 8  ;;  %v572_v44 = vxor.u32 %v1110_v42, %v524_v1 }
  0xe9   :  { %v625_v35 = vsel %vm1591_vm6, %v279_v20, 0.0  ;;  %v282_v50 = vadd.f32 %v281_v30, %v1563_v12  ;;  %1206 = vmatpush3.bf16.msra.mxu1 %v661_v26  ;;  %v643_v36 = vmax.f32 %v627_v15, 0.0  ;;  %v1120_v12 = vshrl.u32 %v566_v41, 8  ;;  %v139_v39 = vpop.permute.xlu1 %138 }
  0xea   :  { %v628_v40 = vsel %vm1609_vm7, %v290_v22, 0.0  ;;  %1207 = vmatprep.subr.bf16.mxu1 %v662_v17  ;;  %v641_v13 = vmax.f32 %v625_v35, 0.0  ;;  %vm1635_vm11 = vcmp.ge.s32.totalorder %v1122_v29, 8388608  ;;  %v1125_v15 = vshrl.u32 %v571_v18, 8 }
  0xeb   :  { %v644_v5 = vmax.f32 %v628_v40, 0.0  ;;  %v626_v58 = vsel %vm1613_vm8, %v282_v50, 0.0  ;;  %v134_v28 = vpop.permute.xlu0 %133  ;;  %vm1641_vm12 = vcmp.ge.s32.totalorder %v1120_v12, 8388608  ;;  %v1123_v22 = vshrl.u32 %v569_v31, 8 }
  0xec   :  { %v642_v0 = vmax.f32 %v626_v58, 0.0  ;;  %v1126_v35 = vshrl.u32 %v572_v44, 8  ;;  %v1124_v6 = vshrl.u32 %v570_v62, 8  ;;  %vm1652_vm13 = vcmp.ge.s32.totalorder %v1125_v15, 8388608 }
  0xed   :  { %v1199_v8 = vpop.f32.mrb[8].mxu0  ;;  %1208 = vmatpush3.bf16.msra.mxu1 %v662_v17  ;;  %v664_v19 = vpack.c.bf16 %v644_v5, %v643_v36  ;;  %vm1656_vm14 = vcmp.ge.s32.totalorder %v1123_v22, 8388608  ;;  %v149_v5 = vpop.permute.xlu1 %148  ;;  %v807_v26 = vstv %s806_s26 }
  0xee   :  { %v303_v11 = vadd.f32 %v1199_v8, %v124_v61  ;;  %v294_v25 = vpop.f32.mrb[9].mxu0  ;;  %v663_v52 = vpack.c.bf16 %v642_v0, %v641_v13  ;;  %vm620_vm15 = vcmp.ge.s32.totalorder %v1126_v35, 8388608  ;;  %vm618_vm0 = vcmp.ge.s32.totalorder %v1124_v6, 8388608 }
  0xef   :  { %v295_v9 = vadd.f32 %v294_v25, %v114_v3  ;;  %v1200_v37 = vpop.f32.mrb[10].mxu0  ;;  %v144_v7 = vpop.permute.xlu0 %143  ;;  %v810_v44 = vadd.s32 %v807_v26, %v349_v51  ;;  %v814_v46 = vadd.s32 %v807_v26, %v353_v57  ;;  %v812_v45 = vadd.s32 %v807_v26, %v351_v63 }
  0xf0   :  { %v631_v17 = vsel %vm1627_vm9, %v303_v11, 0.0  ;;  %v306_v34 = vadd.f32 %v1200_v37, %v129_v43  ;;  %v297_v20 = vpop.f32.mrb[11].mxu0  ;;  %1209 = vmatprep.subr.bf16.mxu1 %v663_v52  ;;  %v1246_v37 = vld [vmem:[%s1765_s5 + $0x18] sm:$0xff]   ;;  %v815_v48 = vadd.s32 %v807_v26, %v354_v4 }
  0xf1   :  { %v629_v3 = vsel %vm1631_vm10, %v295_v9, 0.0  ;;  %v298_v23 = vadd.f32 %v297_v20, %v1606_v16  ;;  %1210 = vmatpush3.bf16.msra.mxu1 %v663_v52  ;;  %v647_v30 = vmax.f32 %v631_v17, 0.0  ;;  %v1245_v9 = vld [vmem:[%s1765_s5 + $0x10] sm:$0xff]   ;;  %v808_v17 = vadd.s32 %v807_v26, %v347_v53  ;;  %v1702_v16 = vpop.permute.xlu1 %684 }
  0xf2   :  { %v632_v1 = vsel %vm1635_vm11, %v306_v34, 0.0  ;;  %1211 = vmatprep.subr.bf16.mxu1 %v664_v19  ;;  %v645_v32 = vmax.f32 %v629_v3, 0.0  ;;  %v811_v34 = vadd.s32 %v807_v26, %v350_v54  ;;  %v809_v20 = vadd.s32 %v807_v26, %v348_v56 }
  0xf3   :  { %v648_v41 = vmax.f32 %v632_v1, 0.0  ;;  %v630_v61 = vsel %vm1641_vm12, %v298_v23, 0.0  ;;  %v818_v21 = vadd.s32 %v810_v44, %v1489_v59  ;;  %v816_v62 = vadd.s32 %v808_v17, %v1489_v59 }
  0xf4   :  { %v646_v50 = vmax.f32 %v630_v61, 0.0  ;;  %v817_v3 = vadd.s32 %v809_v20, %v1489_v59  ;;  %v822_v56 = vadd.s32 %v814_v46, %v1489_v59  ;;  %v813_v23 = vadd.s32 %v807_v26, %v352_v10  ;;  %v1700_v61 = vpop.permute.xlu0 %679 }
  0xf5   :  { %v1203_v40 = vpop.f32.mrb[12].mxu0  ;;  %1212 = vmatpush3.bf16.msra.mxu1 %v664_v19  ;;  %v666_v27 = vpack.c.bf16 %v648_v41, %v647_v30  ;;  %v1133_v51 = vshrl.u32 %v818_v21, 16  ;;  %v1131_v47 = vshrl.u32 %v816_v62, 16  ;;  %v820_v15 = vadd.s32 %v812_v45, %v1489_v59 }
  0xf6   :  { %v319_v29 = vadd.f32 %v1203_v40, %v144_v7  ;;  %v310_v38 = vpop.f32.mrb[13].mxu0  ;;  %v665_v36 = vpack.c.bf16 %v646_v50, %v645_v32  ;;  %v1132_v54 = vshrl.u32 %v817_v3, 16  ;;  %v823_v55 = vadd.s32 %v815_v48, %v1489_v59 }
  0xf7   :  { %v311_v58 = vadd.f32 %v310_v38, %v134_v28  ;;  %v1204_v42 = vpop.f32.mrb[14].mxu0  ;;  %v1244_v28 = vld [vmem:[%s1765_s5 + $0x8] sm:$0xff]   ;;  %v842_v1 = vxor.u32 %v1133_v51, %v818_v21  ;;  %v840_v49 = vxor.u32 %v1131_v47, %v816_v62  ;;  %v1137_v22 = vshrl.u32 %v822_v56, 16 }
  0xf8   :  { %v635_v13 = vsel %vm1652_vm13, %v319_v29, 0.0  ;;  %v322_v0 = vadd.f32 %v1204_v42, %v149_v5  ;;  %v313_v12 = vpop.f32.mrb[15].mxu0  ;;  %1213 = vmatprep.subr.bf16.mxu1 %v665_v36  ;;  %v841_v63 = vxor.u32 %v1132_v54, %v817_v3  ;;  %v821_v30 = vadd.s32 %v813_v23, %v1489_v59 }
  0xf9   :  { %v633_v14 = vsel %vm1656_vm14, %v311_v58, 0.0  ;;  %v314_v8 = vadd.f32 %v313_v12, %v139_v39  ;;  %1214 = vmatpush3.bf16.msra.mxu1 %v665_v36  ;;  %v651_v19 = vmax.f32 %v635_v13, 0.0  ;;  %v819_v39 = vadd.s32 %v811_v34, %v1489_v59  ;;  %v690_v36 = vpop.permute.xlu0 %689 }
  0xfa   :  { %v636_v24 = vsel %vm620_vm15, %v322_v0, 0.0  ;;  %1215 = vmatprep.subr.bf16.mxu1 %v666_v27  ;;  %v649_v25 = vmax.f32 %v633_v14, 0.0  ;;  %v1135_v41 = vshrl.u32 %v820_v15, 16  ;;  %v850_v60 = vmul.u32 2246822507, %v842_v1 }
  0xfb   :  { %v652_v18 = vmax.f32 %v636_v24, 0.0  ;;  %v634_v11 = vsel %vm618_vm0, %v314_v8, 0.0  ;;  %v1134_v53 = vshrl.u32 %v819_v39, 16  ;;  %v848_v4 = vmul.u32 2246822507, %v840_v49  ;;  %v695_v24 = vpop.permute.xlu1 %694 }
  0xfc   :  { %v650_v33 = vmax.f32 %v634_v11, 0.0  ;;  %v1138_v32 = vshrl.u32 %v823_v55, 16  ;;  %v849_v2 = vmul.u32 2246822507, %v841_v63  ;;  %v846_v10 = vxor.u32 %v1137_v22, %v822_v56 }
  0xfd   :  { %1216 = vmatpush3.bf16.msra.mxu1 %v666_v27  ;;  %v668_v52 = vpack.c.bf16 %v652_v18, %v651_v19  ;;  %v843_v57 = vxor.u32 %v1134_v53, %v819_v39  ;;  %v1136_v50 = vshrl.u32 %v821_v30, 16  ;;  %v844_v6 = vxor.u32 %v1135_v41, %v820_v15 }
  0xfe   :  { %v667_v31 = vpack.c.bf16 %v650_v33, %v649_v25  ;;  %v1141_v7 = vshrl.u32 %v850_v60, 13  ;;  %v1139_v40 = vshrl.u32 %v848_v4, 13  ;;  %v847_v29 = vxor.u32 %v1138_v32, %v823_v55  ;;  %v1704_v25 = vpop.permute.xlu0 %962 }
  0xff   :  { %v851_v35 = vmul.u32 2246822507, %v843_v57  ;;  %v1140_v38 = vshrl.u32 %v849_v2, 13  ;;  %v854_v43 = vmul.u32 2246822507, %v846_v10  ;;  %v845_v59 = vxor.u32 %v1136_v50, %v821_v30  ;;  %v968_v17 = vpop.permute.xlu1 %967 }
 0x100   :  { %1217 = vmatprep.subr.bf16.mxu1 %v667_v31  ;;  %v852_v5 = vmul.u32 2246822507, %v844_v6  ;;  %v874_v58 = vxor.u32 %v1141_v7, %v850_v60  ;;  %v872_v42 = vxor.u32 %v1139_v40, %v848_v4  ;;  %v855_v0 = vmul.u32 2246822507, %v847_v29 }
 0x101   :  { %1218 = vmatpush3.bf16.msra.mxu1 %v667_v31  ;;  %v1142_v27 = vshrl.u32 %v851_v35, 13  ;;  %v873_v12 = vxor.u32 %v1140_v38, %v849_v2  ;;  %v1145_v14 = vshrl.u32 %v854_v43, 13  ;;  %v853_v8 = vmul.u32 2246822507, %v845_v59 }
 0x102   :  { %1219 = vmatprep.subr.bf16.mxu1 %v668_v52  ;;  %v1143_v19 = vshrl.u32 %v852_v5, 13  ;;  %v882_v18 = vmul.u32 3266489909, %v874_v58  ;;  %v880_v11 = vmul.u32 3266489909, %v872_v42  ;;  %v700_v3 = vpop.permute.xlu0 %699 }
 0x103   :  { %v875_v13 = vxor.u32 %v1142_v27, %v851_v35  ;;  %v881_v31 = vmul.u32 3266489909, %v873_v12  ;;  %v973_v23 = vpop.permute.xlu1 %972 }
 0x104   :  { %v1149_v26 = vshrl.u32 %v882_v18, 16  ;;  %v1147_v44 = vshrl.u32 %v880_v11, 16 }
 0x105   :  { %1220 = vmatpush3.bf16.msra.mxu1 %v668_v52  ;;  %v883_v33 = vmul.u32 3266489909, %v875_v13  ;;  %v1146_v52 = vshrl.u32 %v855_v0, 13  ;;  %v1148_v21 = vshrl.u32 %v881_v31, 16 }
 0x106   :  { %v906_v45 = vxor.u32 %v1149_v26, %v882_v18  ;;  %v904_v51 = vxor.u32 %v1147_v44, %v880_v11  ;;  %v705_v57 = vpop.permute.xlu0 %704 }
 0x107   :  { %v1150_v34 = vshrl.u32 %v883_v33, 16  ;;  %v879_v20 = vxor.u32 %v1146_v52, %v855_v0  ;;  %v905_v48 = vxor.u32 %v1148_v21, %v881_v31  ;;  %v978_v50 = vpop.permute.xlu1 %977 }
 0x108   :  { %1222 = vmatmul.mubr.bf16.vlgmr.msra.gmra.mrb[0].mxu1 %v1244_v28  ;;  %v878_v28 = vxor.u32 %v1145_v14, %v854_v43  ;;  %v1157_v1 = vshrl.u32 %v906_v45, 8  ;;  %v1155_v49 = vshrl.u32 %v904_v51, 8 }
 0x109   :  { %1225 = vmatprep.mubr.bf16.mxu1 %v1245_v9  ;;  %v1144_v9 = vshrl.u32 %v853_v8, 13  ;;  %v907_v47 = vxor.u32 %v1150_v34, %v883_v33  ;;  %v887_v53 = vmul.u32 3266489909, %v879_v20  ;;  %v1156_v22 = vshrl.u32 %v905_v48, 8 }
 0x10a   :  { %v886_v62 = vmul.u32 3266489909, %v878_v28  ;;  %vm1706_vm1 = vcmp.ge.s32.totalorder %v1157_v1, 3355443  ;;  %vm1710_vm2 = vcmp.ge.s32.totalorder %v1155_v49, 3355443 }
 0x10b   :  { %v877_v39 = vxor.u32 %v1144_v9, %v853_v8  ;;  %v1158_v55 = vshrl.u32 %v907_v47, 8  ;;  %v1154_v63 = vshrl.u32 %v887_v53, 16  ;;  %vm929_vm4 = vcmp.ge.s32.totalorder %v1156_v22, 3355443  ;;  %v983_v18 = vpop.permute.xlu1 %982 }
 0x10c   :  { %v1153_v54 = vshrl.u32 %v886_v62, 16 }
 0x10d   :  { %v885_v56 = vmul.u32 3266489909, %v877_v39  ;;  %vm1715_vm3 = vcmp.ge.s32.totalorder %v1158_v55, 3355443  ;;  %v911_v27 = vxor.u32 %v1154_v63, %v887_v53 }
 0x10e   :  { %v910_v30 = vxor.u32 %v1153_v54, %v886_v62 }
 0x10f   :  { %v1152_v41 = vshrl.u32 %v885_v56, 16  ;;  %v1162_v14 = vshrl.u32 %v911_v27, 8  ;;  %v988_v53 = vpop.permute.xlu1 %987 }
 0x110   :  { %1226 = vmatmul.mubr.bf16.gmra.mrb[4].mxu1 %v1246_v37  ;;  %v876_v37 = vxor.u32 %v1143_v19, %v852_v5  ;;  %v1161_v43 = vshrl.u32 %v910_v30, 8 }
 0x111   :  { %v909_v59 = vxor.u32 %v1152_v41, %v885_v56  ;;  %vm1735_vm7 = vcmp.ge.s32.totalorder %v1162_v14, 3355443 }
 0x112   :  { %v884_v46 = vmul.u32 3266489909, %v876_v37  ;;  %vm1726_vm5 = vcmp.ge.s32.totalorder %v1161_v43, 3355443 }
 0x113   :  { %v1160_v19 = vshrl.u32 %v909_v59, 8 }
 0x114   :  { %v1151_v15 = vshrl.u32 %v884_v46, 16 }
 0x115   :  { %vm933_vm8 = vcmp.ge.s32.totalorder %v1160_v19, 3355443 }
 0x116   :  { %v908_v4 = vxor.u32 %v1151_v15, %v884_v46 }
 0x118   :  { %v1159_v42 = vshrl.u32 %v908_v4, 8 }
 0x11a   :  { %vm1730_vm6 = vcmp.ge.s32.totalorder %v1159_v42, 3355443 }
 0x1db   :  { %v1223_v60 = vpop.f32.mrb[0].mxu1 }
 0x1dc   :  { %v784_v35 = vadd.f32 %v1223_v60, %v690_v36  ;;  %v775_v2 = vpop.f32.mrb[1].mxu1  ;;  %v710_v36 = vpop.permute.xlu0 %709 }
 0x1dd   :  { %v776_v6 = vadd.f32 %v775_v2, %v1700_v61  ;;  %v1224_v7 = vpop.f32.mrb[2].mxu1  ;;  %v998_v60 = vpop.permute.xlu1 %997 }
 0x1de   :  { %v787_v29 = vadd.f32 %v1224_v7, %v695_v24  ;;  %v778_v38 = vpop.f32.mrb[3].mxu1  ;;  %v938_v5 = vsel %vm1706_vm1, %v784_v35, 0.0  ;;  %v1022_v7 = vstv %s1761_s1 }
 0x1df   :  { %v936_v58 = vsel %vm1710_vm2, %v776_v6, 0.0  ;;  %v779_v61 = vadd.f32 %v778_v38, %v1702_v16  ;;  %v946_v8 = vmax.f32 %v938_v5, 0.0 }
 0x1e0   :  { %v944_v13 = vmax.f32 %v936_v58, 0.0  ;;  %v939_v0 = vsel %vm1715_vm3, %v787_v29, 0.0  ;;  %v715_v26 = vpop.permute.xlu0 %714 }
 0x1e1   :  { %v937_v12 = vsel %vm929_vm4, %v779_v61, 0.0  ;;  %v947_v31 = vmax.f32 %v939_v0, 0.0  ;;  %v1002_v21 = vmul.f32 %v973_v23, %v946_v8 }
 0x1e2   :  { %v945_v24 = vmax.f32 %v937_v12, 0.0  ;;  %v1000_v16 = vmul.f32 %v1704_v25, %v944_v13 }
 0x1e3   :  { %v1227_v11 = vpop.f32.mrb[4].mxu1  ;;  %v1003_v51 = vmul.f32 %v978_v50, %v947_v31 }
 0x1e4   :  { %v1001_v28 = vmul.f32 %v968_v17, %v945_v24  ;;  %v800_v9 = vadd.f32 %v1227_v11, %v710_v36  ;;  %v791_v37 = vpop.f32.mrb[5].mxu1  ;;  %v993_v22 = vpop.permute.xlu0 %992 }
 0x1e5   :  { %v792_v44 = vadd.f32 %v791_v37, %v700_v3  ;;  %v1228_v34 = vpop.f32.mrb[6].mxu1 }
 0x1e6   :  { %v1008_v62 = vadd.f32 %v1001_v28, %v1000_v16  ;;  %v803_v39 = vadd.f32 %v1228_v34, %v715_v26  ;;  %v794_v46 = vpop.f32.mrb[7].mxu1  ;;  %v942_v45 = vsel %vm1726_vm5, %v800_v9, 0.0 }
 0x1e7   :  { %v940_v25 = vsel %vm1730_vm6, %v792_v44, 0.0  ;;  %v795_v17 = vadd.f32 %v794_v46, %v705_v57  ;;  %v950_v56 = vmax.f32 %v942_v45, 0.0 }
 0x1e8   :  { %v1009_v47 = vadd.f32 %v1008_v62, %v1002_v21  ;;  %v948_v3 = vmax.f32 %v940_v25, 0.0  ;;  %v943_v48 = vsel %vm1735_vm7, %v803_v39, 0.0 }
 0x1e9   :  { %v941_v54 = vsel %vm933_vm8, %v795_v17, 0.0  ;;  %v951_v55 = vmax.f32 %v943_v48, 0.0  ;;  %v1006_v30 = vmul.f32 %v993_v22, %v950_v56 }
 0x1ea   :  { %v1004_v23 = vmul.f32 %v983_v18, %v948_v3  ;;  %v1010_v15 = vadd.f32 %v1009_v47, %v1003_v51  ;;  %v949_v1 = vmax.f32 %v941_v54, 0.0 }
 0x1eb   :  { %v1007_v57 = vmul.f32 %v998_v60, %v951_v55 }
 0x1ec   :  { %v1011_v49 = vadd.f32 %v1010_v15, %v1004_v23  ;;  %v1005_v63 = vmul.f32 %v988_v53, %v949_v1 }
 0x1ee   :  { %v1012_v41 = vadd.f32 %v1011_v49, %v1005_v63 }
 0x1f0   :  { %v1013_v4 = vadd.f32 %v1012_v41, %v1006_v30 }
 0x1f2   :  { %v1014_v35 = vadd.f32 %v1013_v4, %v1007_v57 }
 0x1f4   :  { %v1015_v32 = vrot.slane %v1014_v35, 4 }
 0x1f6   :  { %v1016_v2 = vadd.f32 %v1015_v32, %v1014_v35 }
 0x1f8   :  { %v1017_v10 = vrot.slane %v1016_v2, 2 }
 0x1fa   :  { %v1018_v50 = vadd.f32 %v1017_v10, %v1016_v2 }
 0x1fc   :  { %v1019_v6 = vrot.slane %v1018_v50, 1 }
 0x1fe   :  { %v1020_v40 = vadd.f32 %v1019_v6, %v1018_v50 }
 0x200   :  { %v1023_v27 = vadd.f32 %v1022_v7, %v1020_v40 }
 0x202   :  { %v1024_v29 = vsub.f32 0.0, %v1023_v27 }
 0x204   :  { %v1025_v38 = vmul.f32 1.442695, %v1024_v29 }
 0x206   :  { %1247 = vpow2.f32 %v1025_v38 }
 0x210   :  { %v1248_v43 = vpop.eup %1247 }
 0x211   :  { %v1027_v59 = vadd.f32 1.0, %v1248_v43 }
 0x213   :  { %1249 = vrcp.f32 %v1027_v59 }
 0x21d   :  { %v1250_v36 = vpop.eup %1249 }
 0x21e   :  { %1030 = vst [vmem:[#allocation4] sm:$0x1] %v1250_v36 }
 0x21f   :  { %1262 = shalt.err (!%p1259_p4)
}
 0x220   :  { %s1263_s10 = scalar_lea.hbm %s1768_s8, 16 }
 0x221   :  { %p1264_p5 = scmp.ne.s32.totalorder %s1768_s8, %s1263_s10  ;;  %p1267_p6 = scmp.lt.u32.totalorder %s1263_s10, %s1768_s8 }
 0x223   :  { %p1269_p7 = pnand %p1267_p6, %p1264_p5 }
 0x225   :  { %1272 = shalt.err (!%p1269_p7)
}
 0x226   :  { %1040 = dma.vmem_to_hbm [thread:$0]  %s1038_s28, 16, %s1768_s8, [#allocation5]  }
 0x227   :  { %1273 = dma.done.wait [#allocation5], 16  }
 0x228   :  { %1274 = vsyncadd [#allocation5], 4294967280 }
 0x229   :  { %1044 = vsyncpa [#allocation5], 1 }

</bundles_post_ra>
